<compile_context>
chip_gen: v6e
topology: v6e:2x2x1
jax: 0.10.0
libtpu: 0.0.40
codegen_flags: <defaults>
</compile_context>

<pallas_src>
import functools

import jax
import jax.numpy as jnp
import numpy as np
from jax.experimental import pallas as pl
from jax.experimental.pallas import tpu as pltpu

# Whole-array-in-VMEM spec (no blocking/pipelining — used only for tiny arrays).
_VMEM_SPEC = pl.BlockSpec(memory_space=pltpu.MemorySpace.VMEM)

# Below this many bytes (3*V*4) the pallas_call dispatch + fusion break costs
# more than it saves -> use the plain-XLA fast path.
_PALLAS_MIN_BYTES = 1 << 20
# Max lanes per vertex tile.  (1,3,TV) f32 pads to 8 sublanes -> 32*TV bytes
# per buffer; TV=65536 -> 2 MiB/buffer, <=12 MiB resident double-buffered
# (fits v5e 16 MiB scoped default and v7x 64 MiB physical VMEM).
_TV_MAX_LANES = 65536


def _round_up(x, m):
    return ((x + m - 1) // m) * m


def _cdiv(a, b):
    return -(-a // b)


# ---------------------------------------------------------------------------
# Pallas kernels (lane-dense layout: vertex axis V lives in the 128-wide lanes)
# ---------------------------------------------------------------------------
def _mesh_normalize_kernel(v_ref, o_ref):
    v = v_ref[...]                                            # (1, 3, V)
    vmax = jnp.max(v, axis=-1, keepdims=True)                 # (1, 3, 1) lane reduce
    vmin = jnp.min(v, axis=-1, keepdims=True)
    centered = v - (vmin + vmax) * 0.5
    # Matches PyTorch mesh_normalize exactly: divides by max(centered) (not
    # max(|centered|)) and has no zero-guard for degenerate meshes.
    biggest = jnp.max(centered, axis=(1, 2), keepdims=True)   # (1, 1, 1)
    o_ref[...] = centered / biggest


def _partial_sum_kernel(iv_ref, dv_ref, psum_ref):
    # Per-tile partial sum of v = ivertices + delta over the lane (vertex) axis.
    v = iv_ref[...] + dv_ref[...]                             # (1, 3, TV)
    s = jnp.sum(v, axis=-1, keepdims=True)                    # (1, 3, 1)
    psum_ref[...] = jnp.broadcast_to(s, psum_ref.shape)       # lane-dense store


def _apply_mean_kernel(mean_ref, iv_ref, dv_ref, o_ref):
    mean = mean_ref[:, :, 0:1]                                # (1, 3, 1)
    o_ref[...] = iv_ref[...] + dv_ref[...] - mean             # (1, 3, TV)


# TODO(synk): if profiling ever shows the tiled kernels vld/vst- or VPU-slot
# bound (they are HBM-bound), repack so V also fills the sublane axis instead
# of leaving 5/8 sublanes empty per vreg.


# ---------------------------------------------------------------------------
# Pallas wrappers
# ---------------------------------------------------------------------------
def mesh_normalize_lane_dense(vertices_t):
    """vertices_t: (1, 3, V) lane-dense.  One-time init cost."""
    b, c, v = vertices_t.shape
    # Whole array in VMEM only while it comfortably fits (8-sublane padding).
    if 2 * b * 8 * v * 4 <= (12 << 20):
        return pl.pallas_call(
            _mesh_normalize_kernel,
            out_shape=jax.ShapeDtypeStruct(vertices_t.shape, vertices_t.dtype),
            in_specs=[_VMEM_SPEC],
            out_specs=_VMEM_SPEC,
        )(vertices_t)
    # TODO(synk): tile mesh_normalize too if meshes ever exceed ~400K vertices
    # (init-only, so plain XLA is fine here).
    vmax = jnp.max(vertices_t, axis=-1, keepdims=True)
    vmin = jnp.min(vertices_t, axis=-1, keepdims=True)
    centered = vertices_t - (vmin + vmax) * 0.5
    return centered / jnp.max(centered, axis=(1, 2), keepdims=True)


def _centered_vertices_tiled(iv_t, dv_t, true_v, tile_v):
    """Large-V path: (1,3,Vp) lane-dense, Vp = n_tiles * tile_v (zero-padded)."""
    b, c, vp = iv_t.shape
    nt = vp // tile_v
    cparams = pltpu.CompilerParams(
        dimension_semantics=("parallel",),        # tiles shard across v7x's 2 TCs
        vmem_limit_bytes=32 * 1024 * 1024,        # headroom on v5e's 16 MiB default
    )
    # Pass 1: per-tile partial sums (independent -> parallel grid axis).
    psums = pl.pallas_call(
        _partial_sum_kernel,
        out_shape=jax.ShapeDtypeStruct((nt, c, 128), jnp.float32),
        grid=(nt,),
        in_specs=[pl.BlockSpec((1, c, tile_v), lambda i: (0, 0, i)),
                  pl.BlockSpec((1, c, tile_v), lambda i: (0, 0, i))],
        out_specs=pl.BlockSpec((1, c, 128), lambda i: (i, 0, 0)),
        compiler_params=cparams,
    )(iv_t, dv_t)
    # Tiny cross-tile combine in XLA; padded lanes are zero so 1/true_v is exact.
    mean = jnp.sum(psums[:, :, 0], axis=0) * (1.0 / true_v)           # (3,)
    mean_lanes = jnp.broadcast_to(mean.reshape(1, c, 1), (1, c, 128))
    # Pass 2: subtract the mean, tile by tile (independent -> parallel).
    return pl.pallas_call(
        _apply_mean_kernel,
        out_shape=jax.ShapeDtypeStruct((b, c, vp), iv_t.dtype),
        grid=(nt,),
        in_specs=[pl.BlockSpec((1, c, 128), lambda i: (0, 0, 0)),
                  pl.BlockSpec((1, c, tile_v), lambda i: (0, 0, i)),
                  pl.BlockSpec((1, c, tile_v), lambda i: (0, 0, i))],
        out_specs=pl.BlockSpec((1, c, tile_v), lambda i: (0, 0, i)),
        compiler_params=cparams,
    )(mean_lanes, iv_t, dv_t)


# ---------------------------------------------------------------------------
# Jitted forward implementation (one executable per forward call)
# ---------------------------------------------------------------------------
@functools.partial(jax.jit, static_argnames=("predict_vertices", "true_v", "tile_v"))
def _forward_impl(ivertices_t, delta_t, exposure, translation, quaternion,
                  face_features, texture_map, *, predict_vertices, true_v, tile_v):
    out = {}
    # Scalar sigmoid: plain XLA elementwise, fused into the jitted executable.
    out["exp"] = jax.nn.sigmoid(exposure)
    if predict_vertices:
        if tile_v is None:
            # Small-V fast path: single XLA fusion of add + mean + transpose;
            # no kernel dispatch, no extra HBM round trip.
            v_t = ivertices_t + delta_t                               # (1, 3, V)
            v_t = v_t - jnp.sum(v_t, axis=-1, keepdims=True) * (1.0 / true_v)
        else:
            v_t = _centered_vertices_tiled(ivertices_t, delta_t, true_v, tile_v)
    else:
        v_t = ivertices_t
    # PyTorch (1, V, 3) layout restored only at the API boundary (output dict
    # contract); kernels never store a 3-lane-wide last dim.
    out["vertices"] = jnp.transpose(v_t[:, :, :true_v], (0, 2, 1))
    # translation / quaternion: pure index/reshape glue (stack/select identity):
    #   stack(translation[:, frmi, None], 2)[:, :, :, 0] == translation[:, None, :, 0]
    #   stack(quaternion[:, frmi], 1)[:, :, 0]            == quaternion[:, :, 0]
    out["translation"] = translation[:, None, :, 0]                   # (1, 1, P, T, 3)
    out["quaternion"] = quaternion[:, :, 0]                           # (1, P, 2, 4)
    out["face_features"] = face_features
    out["texture_maps"] = texture_map
    return out


# ---------------------------------------------------------------------------
# EncoderMulti (JAX / Pallas version)
# ---------------------------------------------------------------------------
class EncoderMulti:
    def __init__(self, config, ivertices, faces, face_features, width, height):
        self.config = config
        P = config["number_of_pieces"]
        T = config["number_of_terms"]
        # parameters (deterministic init, same as nn.Module __init__)
        self.translation = jnp.zeros((1, P, 1, T, 3), jnp.float32)
        self.quaternion = jnp.ones((1, P, 1, 2, 4), jnp.float32)
        self.face_features = jnp.asarray(face_features, jnp.float32)[None]
        self.texture_map = jnp.ones(
            (1, 3, config["texture_size"], config["texture_size"]), jnp.float32
        )
        self.aspect_ratio = height / width
        self.exposure_fraction = 5.0 * jnp.ones((1, 1), jnp.float32)
        self._faces = faces  # unused in forward (kept for parity)

        V = int(ivertices.shape[0])
        self._true_v = V
        iv_t = jnp.asarray(ivertices, jnp.float32).T[None]       # (1, 3, V) lane-dense
        iv_t = mesh_normalize_lane_dense(iv_t)                    # init-only Pallas kernel

        predict = bool(config["predict_vertices"])
        use_pallas = predict and (3 * V * 4 >= _PALLAS_MIN_BYTES)
        if use_pallas:
            # Pick a tile size <= _TV_MAX_LANES that minimizes lane padding.
            v128 = _round_up(V, 128)
            nt = _cdiv(v128, _TV_MAX_LANES)
            tv = _round_up(_cdiv(v128, nt), 128)
            vp = nt * tv
            self._tile_v = tv
            # Store padded (zeros in the pad keep the sum over V exact).
            iv_t = jnp.pad(iv_t, ((0, 0), (0, 0), (0, vp - V)))
        else:
            self._tile_v = None
        self.ivertices_t = iv_t                                   # normalized, lane-dense
        if predict:
            # delta-vertex parameter, stored lane-dense (== zeros(1, V, 3).T)
            self.vertices_t = jnp.zeros_like(iv_t)
        else:
            self.vertices_t = None

    def forward(self):
        return _forward_impl(
            self.ivertices_t,
            self.vertices_t,
            self.exposure_fraction,
            self.translation,
            self.quaternion,
            self.face_features,
            self.texture_map,
            predict_vertices=bool(self.config["predict_vertices"]),
            true_v=self._true_v,
            tile_v=self._tile_v,
        )


# ---------------------------------------------------------------------------
# main
# ---------------------------------------------------------------------------
if __name__ == "__main__":
    key = jax.random.PRNGKey(0)
    k1, k2, k3 = jax.random.split(key, 3)

    config = {
        "number_of_pieces": 2,
        "number_of_terms": 4,
        "predict_vertices": True,
        "texture_size": 8,
    }

    def ref_forward(iv_np, V):
        iv = jnp.asarray(iv_np, jnp.float32)[None]
        vmax = jnp.max(iv, axis=1, keepdims=True)
        vmin = jnp.min(iv, axis=1, keepdims=True)
        c = iv - (vmin + vmax) / 2.0
        ivn = c / jnp.max(c.reshape(1, -1), axis=1)[:, None, None]
        vv = ivn + jnp.zeros((1, V, 3), jnp.float32)          # delta param is zeros
        return ivn, vv - vv.mean(axis=1, keepdims=True)

    # ---- small V: fast path (no per-forward Pallas launch) ----
    V, F = 16, 8
    ivertices = np.asarray(jax.random.normal(k1, (V, 3), jnp.float32))
    faces = (np.arange(F * 3, dtype=np.int32).reshape(F, 3)) % V
    face_features = np.asarray(jax.random.normal(k2, (F, 3, 2), jnp.float32))

    enc = EncoderMulti(config, ivertices, faces, face_features, width=32, height=16)
    out = enc.forward()
    jax.block_until_ready(out)

    ref_iv, ref_vertices = ref_forward(ivertices, V)
    assert out["vertices"].shape == (1, V, 3)
    assert np.allclose(np.asarray(out["vertices"]), np.asarray(ref_vertices), atol=1e-5)
    assert np.allclose(np.asarray(out["exp"]), 1.0 / (1.0 + np.exp(-5.0)), atol=1e-6)
    assert out["translation"].shape == (1, 1, config["number_of_pieces"],
                                        config["number_of_terms"], 3)
    assert out["quaternion"].shape == (1, config["number_of_pieces"], 2, 4)
    assert out["face_features"].shape == (1, F, 3, 2)
    assert out["texture_maps"].shape == (1, 3, 8, 8)

    # ---- predict_vertices=False branch ----
    enc_nv = EncoderMulti(dict(config, predict_vertices=False), ivertices, faces,
                          face_features, width=32, height=16)
    out_nv = enc_nv.forward()
    jax.block_until_ready(out_nv)
    assert out_nv["vertices"].shape == (1, V, 3)
    assert np.allclose(np.asarray(out_nv["vertices"]), np.asarray(ref_iv), atol=1e-5)
    assert np.allclose(np.asarray(out_nv["exp"]), 1.0 / (1.0 + np.exp(-5.0)), atol=1e-6)

    # ---- large V: tiled Pallas path (multi-tile grid + padded vertex axis) ----
    VL = 100_000
    ivertices_l = np.asarray(jax.random.normal(k3, (VL, 3), jnp.float32))
    enc_l = EncoderMulti(config, ivertices_l, faces, face_features, width=32, height=16)
    assert enc_l._tile_v is not None          # tiled Pallas path is actually taken
    out_l = enc_l.forward()
    jax.block_until_ready(out_l)
    ref_iv_l, ref_vertices_l = ref_forward(ivertices_l, VL)
    assert out_l["vertices"].shape == (1, VL, 3)
    assert np.allclose(np.asarray(out_l["vertices"]), np.asarray(ref_vertices_l),
                       atol=1e-5)

    print("KERNEL_OK")
</pallas_src>

<mosaic_0001>
module attributes {stable_mosaic.version = 11 : i64} {
  func.func @_mesh_normalize_kernel(%arg0: memref<1x3x16xf32, #tpu.memory_space<vmem>>, %arg1: memref<1x3x16xf32, #tpu.memory_space<vmem>>) attributes {dimension_semantics = [], scalar_prefetch = 0 : i64, scratch_operands = 0 : i64, tpu.core_type = #tpu.core_type<tc>} {
    %c0 = arith.constant 0 : index
    %c0_0 = arith.constant 0 : index
    %c0_1 = arith.constant 0 : index
    %0 = vector.load %arg0[%c0, %c0_0, %c0_1] : memref<1x3x16xf32, #tpu.memory_space<vmem>>, vector<1x3x16xf32>
    %cst = arith.constant dense<0xFF800000> : vector<1x3xf32>
    %1 = vector.multi_reduction <maximumf>, %0, %cst [2] : vector<1x3x16xf32> to vector<1x3xf32>
    %2 = vector.shape_cast %1 : vector<1x3xf32> to vector<1x3x1xf32>
    %cst_2 = arith.constant dense<0x7F800000> : vector<1x3xf32>
    %3 = vector.multi_reduction <minimumf>, %0, %cst_2 [2] : vector<1x3x16xf32> to vector<1x3xf32>
    %4 = vector.shape_cast %3 : vector<1x3xf32> to vector<1x3x1xf32>
    %5 = arith.addf %4, %2 : vector<1x3x1xf32>
    %cst_3 = arith.constant 5.000000e-01 : f32
    %6 = vector.broadcast %cst_3 : f32 to vector<1x3x1xf32>
    %7 = arith.mulf %5, %6 : vector<1x3x1xf32>
    %8 = vector.broadcast %7 : vector<1x3x1xf32> to vector<1x3x16xf32>
    %9 = arith.subf %0, %8 : vector<1x3x16xf32>
    %cst_4 = arith.constant dense<0xFF800000> : vector<1xf32>
    %10 = vector.multi_reduction <maximumf>, %9, %cst_4 [1, 2] : vector<1x3x16xf32> to vector<1xf32>
    %11 = vector.shape_cast %10 : vector<1xf32> to vector<1x1x1xf32>
    %12 = vector.broadcast %11 : vector<1x1x1xf32> to vector<1x3x16xf32>
    %13 = arith.divf %9, %12 : vector<1x3x16xf32>
    %c0_5 = arith.constant 0 : index
    %c0_6 = arith.constant 0 : index
    %c0_7 = arith.constant 0 : index
    %14 = vector.load %arg1[%c0_5, %c0_6, %c0_7] : memref<1x3x16xf32, #tpu.memory_space<vmem>>, vector<1x3x16xf32>
    tpu.vector_store %arg1[%c0_5, %c0_6, %c0_7], %13 {strides = array<i32>} : memref<1x3x16xf32, #tpu.memory_space<vmem>>, vector<1x3x16xf32>,
    return
  }
}

</mosaic_0001>

<bundles_post_ra>
// kernel: tpu_custom_call.1
= control target key start
LH: loop header
LB: loop body
LE: loop exit
PB: predicated region body
PF: predicated region fallthrough
CT: control target
= control target key end

     0   :  { %vm9_vm0 = vcmask 124928   ;;  %s57_s0 = inlined_call_operand.vmem [shape: f32[1,3,16], index: 0, kind: input, shape index: {}]   ;;  %s58_s1 = inlined_call_operand.vmem [shape: f32[1,3,16], index: 1, kind: output, shape index: {}]  }
   0x1   :  { %v8_v0 = vld [vmem:[%s57_s0] sm:$0x7] }
   0x2   :  { %v10_v1 = vsel %vm9_vm0, %v8_v0, -inf  ;;  %v13_v2 = vsel %vm9_vm0, %v8_v0, inf }
   0x3   :  { %11 = vmax.xlane.f32.xlu0 %v10_v1 }
   0x7   :  { %14 = vmin.xlane.f32.xlu0 %v13_v2 }
  0x8c   :  { %v12_v3 = vpop.xlane.xlu0 %11 }
  0x90   :  { %v15_v4 = vpop.xlane.xlu0 %14 }
  0x91   :  { %v16_v5 = vadd.f32 %v15_v4, %v12_v3 }
  0x93   :  { %v17_v6 = vmul.f32 0.5, %v16_v5 }
  0x95   :  { %v18_v7 = vsub.f32 %v8_v0, %v17_v6 }
  0x97   :  { %v19_v8 = vsel %vm9_vm0, %v18_v7, -inf }
  0x98   :  { %20 = vmax.xlane.f32.xlu1 %v19_v8 }
 0x121   :  { %v21_v9 = vpop.xlane.xlu1 %20 }
 0x122   :  { %v22_v10 = vrot.slane %v21_v9, 4 }
 0x124   :  { %v23_v11 = vmax.f32 %v21_v9, %v22_v10 }
 0x126   :  { %v24_v12 = vrot.slane %v23_v11, 2 }
 0x128   :  { %v25_v13 = vmax.f32 %v23_v11, %v24_v12 }
 0x12a   :  { %v26_v14 = vrot.slane %v25_v13, 1 }
 0x12c   :  { %v27_v15 = vmax.f32 %v25_v13, %v26_v14 }
 0x12e   :  { %35 = vrcp.f32 %v27_v15 }
 0x13b   :  { %v36_v16 = vpop.eup %35 }
 0x13c   :  { %v29_v17 = vmul.f32 %v36_v16, %v18_v7 }
 0x13e   :  { %30 = vst.msk [vmem:[%s58_s1] sm:$0x7] %vm9_vm0, %v29_v17 }

</bundles_post_ra>
